<compile_context>
chip_gen: v7x
topology: tpu7x:2x2x1
jax: 0.10.0
libtpu: 0.0.40
codegen_flags: <defaults>
</compile_context>

<pallas_src>
import numpy as np
import jax
import jax.numpy as jnp
from jax.experimental import pallas as pl
from jax.experimental.pallas import tpu as pltpu


def _positional_encoding_table(max_len: int, d_model: int) -> jnp.ndarray:
    """Exactly the PyTorch PositionalEncoding buffer (without the unsqueeze)."""
    position = np.arange(max_len, dtype=np.float32)[:, None]                 # (L, 1)
    div_term = np.exp(
        np.arange(0, d_model, 2, dtype=np.float32) * (-np.log(10000.0) / d_model)
    )                                                                         # (D/2,)
    pe = np.zeros((max_len, d_model), dtype=np.float32)
    pe[:, 0::2] = np.sin(position * div_term)
    pe[:, 1::2] = np.cos(position * div_term)
    return jnp.asarray(pe)                                                    # (L, D)


def _time_embed_kernel(ts_ref,                       # SMEM: (B,) int32 (scalar prefetch)
                       pe_hbm,                       # HBM : (max_len, D) f32, pl.ANY
                       w1_ref, b1_ref, w2_ref, b2_ref,   # VMEM params
                       o_ref,                        # VMEM: (1, B, D) output
                       x_buf,                        # VMEM scratch: (B, D)
                       sem):                         # DMA semaphores: (B,)
    B, D = x_buf.shape
    max_len = pe_hbm.shape[0]

    # ---- Fused gather: DMA the B selected PE rows HBM -> VMEM ------------------
    copies = []
    for i in range(B):                               # B is small & static -> unrolled
        t = jnp.maximum(jnp.minimum(ts_ref[i], max_len - 1), 0)   # clamp like jnp gather
        copies.append(
            pltpu.make_async_copy(
                pe_hbm.at[pl.ds(t, 1), :],           # (1, D) row in HBM
                x_buf.at[pl.ds(i, 1), :],            # (1, D) row in VMEM scratch
                sem.at[i],
            )
        )
    for c in copies:
        c.start()
    for c in copies:
        c.wait()

    # ---- SiLU MLP: (x @ W1 + b1) -> SiLU -> (@ W2 + b2) ------------------------
    x = x_buf[...]                                                           # (B, D)
    h = jnp.dot(x, w1_ref[...], preferred_element_type=jnp.float32) + b1_ref[...]
    h = h * jax.nn.sigmoid(h)                                                # SiLU
    o = jnp.dot(h, w2_ref[...], preferred_element_type=jnp.float32) + b2_ref[...]

    # Write PyTorch's (B,1,D).permute(1,0,2) == (1,B,D) layout directly.
    o_ref[...] = o[None, :, :].astype(o_ref.dtype)


def timestep_embedder_forward(timesteps, pe, w1, b1, w2, b2):
    """timesteps: (B,) int32; pe: (max_len, D) f32; w*: (D, D) stored as PyTorch weight.T."""
    B = timesteps.shape[0]
    D = pe.shape[-1]

    def vmem_full(shape):
        # full-array block, resident in VMEM for the whole (single-step) grid
        return pl.BlockSpec(shape, lambda i, ts: (0,) * len(shape))

    return pl.pallas_call(
        _time_embed_kernel,
        out_shape=jax.ShapeDtypeStruct((1, B, D), jnp.float32),
        grid_spec=pltpu.PrefetchScalarGridSpec(
            num_scalar_prefetch=1,                    # timesteps -> SMEM, feeds DMA indices
            grid=(1,),
            in_specs=[
                pl.BlockSpec(memory_space=pl.ANY),    # pe table stays in HBM (no 640 KiB copy)
                vmem_full((D, D)),                    # W1 (x @ W layout)
                vmem_full((1, D)),                    # b1
                vmem_full((D, D)),                    # W2
                vmem_full((1, D)),                    # b2
            ],
            out_specs=pl.BlockSpec((1, B, D), lambda i, ts: (0, 0, 0)),
            scratch_shapes=[
                pltpu.VMEM((B, D), jnp.float32),      # gathered PE rows
                pltpu.SemaphoreType.DMA((B,)),        # one DMA sem per gathered row
            ],
        ),
    )(timesteps.astype(jnp.int32), pe, w1, b1.reshape(1, D), w2, b2.reshape(1, D))


if __name__ == "__main__":
    latent_dim = 32
    batch = 2            # caller-side note: batching B to a multiple of 8 (ideally 128)
    max_len = 5000       # is what makes this kernel stop being pure launch overhead.

    key = jax.random.PRNGKey(0)
    k1, k2, k3, k4, k5 = jax.random.split(key, 5)

    # Synthetic params; Linear weights stored transposed vs torch (kernel computes x @ W).
    w1 = jax.random.normal(k1, (latent_dim, latent_dim), jnp.float32) * 0.02
    b1 = jax.random.normal(k2, (latent_dim,), jnp.float32) * 0.02
    w2 = jax.random.normal(k3, (latent_dim, latent_dim), jnp.float32) * 0.02
    b2 = jax.random.normal(k4, (latent_dim,), jnp.float32) * 0.02

    pe = _positional_encoding_table(max_len, latent_dim)                     # (L, D)
    timesteps = jax.random.randint(k5, (batch,), 0, 1000, dtype=jnp.int32)   # (B,)

    out = timestep_embedder_forward(timesteps, pe, w1, b1, w2, b2)
    out = jax.block_until_ready(out)

    assert out.shape == (1, batch, latent_dim), out.shape
    assert out.dtype == jnp.float32

    # Pure-JAX reference (same math the PyTorch module does).
    x_ref = pe[timesteps]                                                    # (B, D)
    h_ref = x_ref @ w1 + b1
    h_ref = h_ref * jax.nn.sigmoid(h_ref)
    ref = (h_ref @ w2 + b2)[None, :, :]                                      # (1, B, D)
    np.testing.assert_allclose(np.asarray(out), np.asarray(ref), rtol=2e-2, atol=2e-3)

    print("KERNEL_OK")
</pallas_src>

<mosaic_0001>
module attributes {stable_mosaic.version = 11 : i64} {
  func.func @_time_embed_kernel(%arg0: i32, %arg1: memref<2xi32, #tpu.memory_space<smem>>, %arg2: memref<5000x32xf32, #tpu.memory_space<any>>, %arg3: memref<32x32xf32, #tpu.memory_space<vmem>>, %arg4: memref<1x32xf32, #tpu.memory_space<vmem>>, %arg5: memref<32x32xf32, #tpu.memory_space<vmem>>, %arg6: memref<1x32xf32, #tpu.memory_space<vmem>>, %arg7: memref<1x2x32xf32, #tpu.memory_space<vmem>>, %arg8: memref<2x32xf32, #tpu.memory_space<vmem>>, %arg9: memref<2x!tpu.dma_semaphore, #tpu.memory_space<semaphore_mem>>) attributes {dimension_semantics = [#tpu.dimension_semantics<arbitrary>], iteration_bounds = array<i64: 1>, scalar_prefetch = 1 : i64, scratch_operands = 2 : i64, tpu.core_type = #tpu.core_type<tc>, window_params = [{}, {pipeline_mode = #tpu.pipeline_mode<synchronous>, transform_indices = @transform_1, window_bounds = array<i64: 32, 32>}, {pipeline_mode = #tpu.pipeline_mode<synchronous>, transform_indices = @transform_2, window_bounds = array<i64: 1, 32>}, {pipeline_mode = #tpu.pipeline_mode<synchronous>, transform_indices = @transform_3, window_bounds = array<i64: 32, 32>}, {pipeline_mode = #tpu.pipeline_mode<synchronous>, transform_indices = @transform_4, window_bounds = array<i64: 1, 32>}, {pipeline_mode = #tpu.pipeline_mode<synchronous>, transform_indices = @transform_5, window_bounds = array<i64: 1, 2, 32>}]} {
    %c0 = arith.constant 0 : index
    %0 = memref.load %arg1[%c0] : memref<2xi32, #tpu.memory_space<smem>>
    %c4999_i32 = arith.constant 4999 : i32
    %1 = arith.minsi %0, %c4999_i32 : i32
    %c0_i32 = arith.constant 0 : i32
    %2 = arith.maxsi %1, %c0_i32 : i32
    %c1 = arith.constant 1 : index
    %3 = memref.load %arg1[%c1] : memref<2xi32, #tpu.memory_space<smem>>
    %c4999_i32_0 = arith.constant 4999 : i32
    %4 = arith.minsi %3, %c4999_i32_0 : i32
    %c0_i32_1 = arith.constant 0 : i32
    %5 = arith.maxsi %4, %c0_i32_1 : i32
    %c0_i32_2 = arith.constant 0 : i32
    %c0_i32_3 = arith.constant 0 : i32
    %6 = tpu.memref_slice %arg2[%2, %c0_i32_3] : memref<5000x32xf32, #tpu.memory_space<any>> -> memref<1x32xf32, #tpu.memory_space<any>>
    %c0_i32_4 = arith.constant 0 : i32
    %c0_i32_5 = arith.constant 0 : i32
    %7 = tpu.memref_slice %arg8[%c0_i32_4, %c0_i32_5] : memref<2x32xf32, #tpu.memory_space<vmem>> -> memref<1x32xf32, #tpu.memory_space<vmem>>
    %8 = tpu.memref_slice %arg9[%c0_i32_2] : memref<2x!tpu.dma_semaphore, #tpu.memory_space<semaphore_mem>> -> memref<1x!tpu.dma_semaphore, #tpu.memory_space<semaphore_mem>>
    %9 = tpu.memref_squeeze %8 : memref<1x!tpu.dma_semaphore, #tpu.memory_space<semaphore_mem>> -> memref<!tpu.dma_semaphore, #tpu.memory_space<semaphore_mem>>
    tpu.enqueue_dma source(%6 : memref<1x32xf32, #tpu.memory_space<any>>) target(%7 : memref<1x32xf32, #tpu.memory_space<vmem>>) target_semaphore(%9 : memref<!tpu.dma_semaphore, #tpu.memory_space<semaphore_mem>>)
    %c1_i32 = arith.constant 1 : i32
    %c0_i32_6 = arith.constant 0 : i32
    %10 = tpu.memref_slice %arg2[%5, %c0_i32_6] : memref<5000x32xf32, #tpu.memory_space<any>> -> memref<1x32xf32, #tpu.memory_space<any>>
    %c1_i32_7 = arith.constant 1 : i32
    %c0_i32_8 = arith.constant 0 : i32
    %11 = tpu.memref_slice %arg8[%c1_i32_7, %c0_i32_8] : memref<2x32xf32, #tpu.memory_space<vmem>> -> memref<1x32xf32, #tpu.memory_space<vmem>>
    %12 = tpu.memref_slice %arg9[%c1_i32] : memref<2x!tpu.dma_semaphore, #tpu.memory_space<semaphore_mem>> -> memref<1x!tpu.dma_semaphore, #tpu.memory_space<semaphore_mem>>
    %13 = tpu.memref_squeeze %12 : memref<1x!tpu.dma_semaphore, #tpu.memory_space<semaphore_mem>> -> memref<!tpu.dma_semaphore, #tpu.memory_space<semaphore_mem>>
    tpu.enqueue_dma source(%10 : memref<1x32xf32, #tpu.memory_space<any>>) target(%11 : memref<1x32xf32, #tpu.memory_space<vmem>>) target_semaphore(%13 : memref<!tpu.dma_semaphore, #tpu.memory_space<semaphore_mem>>)
    %c0_i32_9 = arith.constant 0 : i32
    %c0_i32_10 = arith.constant 0 : i32
    %14 = tpu.memref_slice %arg2[%2, %c0_i32_10] : memref<5000x32xf32, #tpu.memory_space<any>> -> memref<1x32xf32, #tpu.memory_space<any>>
    %c0_i32_11 = arith.constant 0 : i32
    %c0_i32_12 = arith.constant 0 : i32
    %15 = tpu.memref_slice %arg8[%c0_i32_11, %c0_i32_12] : memref<2x32xf32, #tpu.memory_space<vmem>> -> memref<1x32xf32, #tpu.memory_space<vmem>>
    %16 = tpu.memref_slice %arg9[%c0_i32_9] : memref<2x!tpu.dma_semaphore, #tpu.memory_space<semaphore_mem>> -> memref<1x!tpu.dma_semaphore, #tpu.memory_space<semaphore_mem>>
    %17 = tpu.memref_squeeze %16 : memref<1x!tpu.dma_semaphore, #tpu.memory_space<semaphore_mem>> -> memref<!tpu.dma_semaphore, #tpu.memory_space<semaphore_mem>>
    tpu.wait_dma2 semaphore(%17 : memref<!tpu.dma_semaphore, #tpu.memory_space<semaphore_mem>>) src(%14 : memref<1x32xf32, #tpu.memory_space<any>>) dst(%15 : memref<1x32xf32, #tpu.memory_space<vmem>>)
    %c1_i32_13 = arith.constant 1 : i32
    %c0_i32_14 = arith.constant 0 : i32
    %18 = tpu.memref_slice %arg2[%5, %c0_i32_14] : memref<5000x32xf32, #tpu.memory_space<any>> -> memref<1x32xf32, #tpu.memory_space<any>>
    %c1_i32_15 = arith.constant 1 : i32
    %c0_i32_16 = arith.constant 0 : i32
    %19 = tpu.memref_slice %arg8[%c1_i32_15, %c0_i32_16] : memref<2x32xf32, #tpu.memory_space<vmem>> -> memref<1x32xf32, #tpu.memory_space<vmem>>
    %20 = tpu.memref_slice %arg9[%c1_i32_13] : memref<2x!tpu.dma_semaphore, #tpu.memory_space<semaphore_mem>> -> memref<1x!tpu.dma_semaphore, #tpu.memory_space<semaphore_mem>>
    %21 = tpu.memref_squeeze %20 : memref<1x!tpu.dma_semaphore, #tpu.memory_space<semaphore_mem>> -> memref<!tpu.dma_semaphore, #tpu.memory_space<semaphore_mem>>
    tpu.wait_dma2 semaphore(%21 : memref<!tpu.dma_semaphore, #tpu.memory_space<semaphore_mem>>) src(%18 : memref<1x32xf32, #tpu.memory_space<any>>) dst(%19 : memref<1x32xf32, #tpu.memory_space<vmem>>)
    %c0_17 = arith.constant 0 : index
    %c0_18 = arith.constant 0 : index
    %22 = vector.load %arg8[%c0_17, %c0_18] : memref<2x32xf32, #tpu.memory_space<vmem>>, vector<2x32xf32>
    %c0_19 = arith.constant 0 : index
    %c0_20 = arith.constant 0 : index
    %23 = vector.load %arg3[%c0_19, %c0_20] : memref<32x32xf32, #tpu.memory_space<vmem>>, vector<32x32xf32>
    %cst = arith.constant dense<0.000000e+00> : vector<2x32xf32>
    %24 = tpu.matmul %22, %23, %cst {dimension_numbers = #tpu.dot_dimension_numbers<[1], [0], [0], [1], [0, 0, 1, 1], [], []>} : vector<2x32xf32>, vector<32x32xf32>, vector<2x32xf32> -> vector<2x32xf32>
    %c0_21 = arith.constant 0 : index
    %c0_22 = arith.constant 0 : index
    %25 = vector.load %arg4[%c0_21, %c0_22] : memref<1x32xf32, #tpu.memory_space<vmem>>, vector<1x32xf32>
    %26 = vector.broadcast %25 : vector<1x32xf32> to vector<2x32xf32>
    %27 = arith.addf %24, %26 : vector<2x32xf32>
    %28 = arith.negf %27 : vector<2x32xf32>
    %29 = math.exp %28 : vector<2x32xf32>
    %cst_23 = arith.constant 1.000000e+00 : f32
    %30 = vector.broadcast %cst_23 : f32 to vector<2x32xf32>
    %31 = arith.addf %30, %29 : vector<2x32xf32>
    %32 = arith.divf %30, %31 : vector<2x32xf32>
    %33 = arith.mulf %27, %32 : vector<2x32xf32>
    %c0_24 = arith.constant 0 : index
    %c0_25 = arith.constant 0 : index
    %34 = vector.load %arg5[%c0_24, %c0_25] : memref<32x32xf32, #tpu.memory_space<vmem>>, vector<32x32xf32>
    %cst_26 = arith.constant dense<0.000000e+00> : vector<2x32xf32>
    %35 = tpu.matmul %33, %34, %cst_26 {dimension_numbers = #tpu.dot_dimension_numbers<[1], [0], [0], [1], [0, 0, 1, 1], [], []>} : vector<2x32xf32>, vector<32x32xf32>, vector<2x32xf32> -> vector<2x32xf32>
    %c0_27 = arith.constant 0 : index
    %c0_28 = arith.constant 0 : index
    %36 = vector.load %arg6[%c0_27, %c0_28] : memref<1x32xf32, #tpu.memory_space<vmem>>, vector<1x32xf32>
    %37 = vector.broadcast %36 : vector<1x32xf32> to vector<2x32xf32>
    %38 = arith.addf %35, %37 : vector<2x32xf32>
    %39 = vector.shape_cast %38 : vector<2x32xf32> to vector<1x2x32xf32>
    %c0_29 = arith.constant 0 : index
    %c0_30 = arith.constant 0 : index
    %c0_31 = arith.constant 0 : index
    %40 = vector.load %arg7[%c0_29, %c0_30, %c0_31] : memref<1x2x32xf32, #tpu.memory_space<vmem>>, vector<1x2x32xf32>
    tpu.vector_store %arg7[%c0_29, %c0_30, %c0_31], %39 {strides = array<i32>} : memref<1x2x32xf32, #tpu.memory_space<vmem>>, vector<1x2x32xf32>,
    return
  }
  func.func @transform_1(%arg0: i32, %arg1: memref<2xi32, #tpu.memory_space<smem>>) -> (i32, i32) {
    %c0_i32 = arith.constant 0 : i32
    %c0_i32_0 = arith.constant 0 : i32
    %c0_i32_1 = arith.constant 0 : i32
    return %c0_i32, %c0_i32_0 : i32, i32
  }
  func.func @transform_2(%arg0: i32, %arg1: memref<2xi32, #tpu.memory_space<smem>>) -> (i32, i32) {
    %c0_i32 = arith.constant 0 : i32
    %c0_i32_0 = arith.constant 0 : i32
    %c0_i32_1 = arith.constant 0 : i32
    return %c0_i32, %c0_i32_0 : i32, i32
  }
  func.func @transform_3(%arg0: i32, %arg1: memref<2xi32, #tpu.memory_space<smem>>) -> (i32, i32) {
    %c0_i32 = arith.constant 0 : i32
    %c0_i32_0 = arith.constant 0 : i32
    %c0_i32_1 = arith.constant 0 : i32
    return %c0_i32, %c0_i32_0 : i32, i32
  }
  func.func @transform_4(%arg0: i32, %arg1: memref<2xi32, #tpu.memory_space<smem>>) -> (i32, i32) {
    %c0_i32 = arith.constant 0 : i32
    %c0_i32_0 = arith.constant 0 : i32
    %c0_i32_1 = arith.constant 0 : i32
    return %c0_i32, %c0_i32_0 : i32, i32
  }
  func.func @transform_5(%arg0: i32, %arg1: memref<2xi32, #tpu.memory_space<smem>>) -> (i32, i32, i32) {
    %c0_i32 = arith.constant 0 : i32
    %c0_i32_0 = arith.constant 0 : i32
    %c0_i32_1 = arith.constant 0 : i32
    %c0_i32_2 = arith.constant 0 : i32
    return %c0_i32, %c0_i32_0, %c0_i32_1 : i32, i32, i32
  }
}

</mosaic_0001>

<bundles_post_ra>
// kernel: tpu_custom_call.1
= control target key start
LH: loop header
LB: loop body
LE: loop exit
PB: predicated region body
PF: predicated region fallthrough
CT: control target
= control target key end

     0   :  { %s572_s0 = inlined_call_operand.vmem [shape: s32[2], index: 0, kind: input, shape index: {}]   ;;  %s573_s1 = inlined_call_operand.vmem [shape: f32[5000,32], index: 1, kind: input, shape index: {}]   ;;  %s574_s2 = inlined_call_operand.vmem [shape: f32[32,32], index: 2, kind: input, shape index: {}]   ;;  %s575_s3 = inlined_call_operand.vmem [shape: f32[1,32], index: 3, kind: input, shape index: {}]   ;;  %s576_s4 = inlined_call_operand.vmem [shape: f32[32,32], index: 4, kind: input, shape index: {}]   ;;  %s577_s5 = inlined_call_operand.vmem [shape: f32[1,32], index: 5, kind: input, shape index: {}]   ;;  %s578_s6 = inlined_call_operand.hbm [shape: f32[1,2,32], index: 6, kind: output, shape index: {}]  }
   0x1   :  { %s11_s23 = sshll.u32 %s572_s0, 4  ;;  %s12_s23 = int_to_ptr.vmem [resolvable:$true] %s11_s23 }
   0x2   :  { %s437_s24 = scalar_lea.vmem %s12_s23, 16  ;;  %p442_p1 = scmp.lt.s32.totalorder %s12_s23, %s12_s23 }
   0x3   :  { %p438_p0 = scmp.ne.s32.totalorder %s12_s23, %s437_s24  ;;  %p443_p2 = scmp.lt.s32.totalorder %s437_s24, %s437_s24 }
   0x5   :  { %p444_p3 = por %p443_p2, %p442_p1 }
   0x7   :  { %p445_p4 = pnand %p444_p3, %p438_p0 }
   0x9   :  { %448 = shalt.err (!%p445_p4)  }
   0xa   :  { %s479_s25 = smov [#allocation5]  }
   0xb   :  { %14 = dma.vmem_to_smem %s12_s23, 16, %s479_s25, [#allocation4] }
   0xc   :  { %471 = dma.done.wait [#allocation4], 16 }
   0xd   :  { %472 = vsyncadd [#allocation4], 4294967280 }
   0xe   :  { %16 = sfence }
   0xf   :  { %17 = vsyncpa [#allocation7], 0  ;;  %s26_s26 = sld [smem:[#allocation5]]  ;;  %s367_s27 = sld [smem:[#allocation5 + $0x1]] }
  0x15   :  { %p27_p5 = scmp.lt.s32.totalorder %s26_s26, 4999  ;;  %p362_p6 = scmp.gt.s32.totalorder %s26_s26, 0 }
  0x16   :  { %p32_p7 = scmp.lt.s32.totalorder %s367_s27, 4999  ;;  %p368_p8 = scmp.gt.s32.totalorder %s367_s27, 0 }
  0x17   :  { %s580_s26 = smov (!%p27_p5, %s26_s26), 4999 }
  0x18   :  { %s582_s27 = smov (!%p32_p7, %s367_s27), 4999  ;;  %s584_s26 = smov (!%p362_p6, %s580_s26), 0 }
  0x19   :  { %s586_s27 = smov (!%p368_p8, %s582_s27), 0  ;;  %s36_s29 = scalar_lea.vmem %s573_s1, %s584_s26 }
  0x1a   :  { %v54_v0 = vld [vmem:[%s36_s29] sm:$0x1] }
  0x1b   :  { %55 = vst [vmem:[#allocation2] sm:$0x1] %v54_v0 }
  0x1c   :  { %80 = vsyncadd [#allocation3], 16  ;;  %s81_s8 = scalar_lea.vmem %s573_s1, %s586_s27 }
  0x1d   :  { %v101_v1 = vld [vmem:[%s81_s8] sm:$0x1] }
  0x1e   :  { %102 = vst [vmem:[#allocation2 + $0x1] sm:$0x1] %v101_v1 }
  0x1f   :  { %127 = vsyncadd [#allocation3 + $0x1], 16 }
  0x20   :  { %473 = dma.done.wait [#allocation3], 16 }
  0x21   :  { %474 = vsyncadd [#allocation3], 4294967280 }
  0x22   :  { %475 = dma.done.wait [#allocation3 + $0x1], 16 }
  0x23   :  { %476 = vsyncadd [#allocation3 + $0x1], 4294967280  ;;  %v480_v2 = vmov 0.0|0.0   ;;  %vm481_vm0 = vmmov 0   ;;  %v482_v3 = vmov 0.0   ;;  %v134_v4 = vld [vmem:[%s574_s2] sm:$0xff] }
  0x24   :  { %416 = vmatprep.subr.bf16.mxu0 %v480_v2  ;;  %402 = vmatprep.mubr.msk.f32.mxu0 %vm481_vm0, %v482_v3  ;;  %v135_v5 = vld [vmem:[%s574_s2 + $0x8] sm:$0xff]  ;;  %v136_v6 = vld [vmem:[%s574_s2 + $0x10] sm:$0xff]  ;;  %v137_v8 = vld [vmem:[%s574_s2 + $0x18] sm:$0xff]  ;;  %vm145_vm1 = vcmask 261120   ;;  %s483_s26 = smov [#allocation6]   ;;  %vm310_vm2 = vcmask 254976  }
  0x25   :  { %422 = vmatprep.subr.bf16.mxu1 %v480_v2  ;;  %413 = vmatprep.mubr.msk.f32.mxu1 %vm481_vm0, %v482_v3  ;;  %v417_v7 = vpack.c.bf16 %v135_v5, %v134_v4  ;;  %v420_v9 = vpack.c.bf16 %v137_v8, %v136_v6  ;;  %v133_v10 = vld [vmem:[#allocation2] sm:$0x3]  ;;  %v227_v12 = vld [vmem:[%s576_s4 + $0x8] sm:$0xff]  ;;  %v228_v14 = vld [vmem:[%s576_s4 + $0x10] sm:$0xff]  ;;  %s318_s27 = sshll.u32 %s483_s26, 4  ;;  %s319_s27 = int_to_ptr.vmem [resolvable:$true] %s318_s27 }
  0x26   :  { %v226_v11 = vld [vmem:[%s576_s4] sm:$0xff]  ;;  %v229_v15 = vld [vmem:[%s576_s4 + $0x18] sm:$0xff]  ;;  %p454_p10 = scmp.lt.s32.totalorder %s319_s27, %s319_s27 }
  0x27   :  { %418 = vmatpush3.bf16.msra.mxu0 %v417_v7  ;;  %v423_v13 = vpack.c.bf16 %v227_v12, %v226_v11  ;;  %v426_v16 = vpack.c.bf16 %v229_v15, %v228_v14  ;;  %v373_v17 = vld [vmem:[%s575_s3] ss:$0 sm:$0xff]  ;;  %s449_s3 = scalar_lea.vmem %s319_s27, 32 }
  0x28   :  { %419 = vmatprep.subr.bf16.mxu0 %v480_v2  ;;  %v376_v26 = vld [vmem:[%s577_s5] ss:$0 sm:$0xff]  ;;  %p450_p9 = scmp.ne.s32.totalorder %s319_s27, %s449_s3  ;;  %p455_p11 = scmp.lt.s32.totalorder %s449_s3, %s449_s3 }
  0x29   :  { %424 = vmatpush3.bf16.msra.mxu1 %v423_v13 }
  0x2a   :  { %425 = vmatprep.subr.bf16.mxu1 %v480_v2  ;;  %p456_p12 = por %p455_p11, %p454_p10 }
  0x2b   :  { %421 = vmatpush3.bf16.msra.mxu0 %v420_v9 }
  0x2c   :  { %p457_p13 = pnand %p456_p12, %p450_p9 }
  0x2d   :  { %427 = vmatpush3.bf16.msra.mxu1 %v426_v16 }
  0x2e   :  { %403 = vmatmul.mubr.msk.f32.vlgmr.msra.gmra.mrb[0].mxu0 %vm145_vm1, %v133_v10 }
 0x101   :  { %v215_v18 = vpop.f32.mrb[0].mxu0 }
 0x102   :  { %v216_v19 = vadd.f32 %v373_v17, %v215_v18  ;;  %v404_v20 = vpop.f32.mrb[1].mxu0 }
 0x104   :  { %v375_v21 = vmul.f32 -1.442695, %v216_v19 }
 0x106   :  { %433 = vpow2.f32 %v375_v21 }
 0x110   :  { %v434_v22 = vpop.eup %433 }
 0x111   :  { %v222_v23 = vadd.f32 1.0, %v434_v22 }
 0x113   :  { %435 = vrcp.f32 %v222_v23 }
 0x11d   :  { %v436_v24 = vpop.eup %435 }
 0x11e   :  { %v225_v25 = vmul.f32 %v436_v24, %v216_v19 }
 0x120   :  { %414 = vmatmul.mubr.msk.f32.vlgmr.msra.gmra.mrb[0].mxu1 %vm145_vm1, %v225_v25 }
 0x1f3   :  { %v306_v27 = vpop.f32.mrb[0].mxu1 }
 0x1f4   :  { %v307_v28 = vadd.f32 %v376_v26, %v306_v27  ;;  %v415_v29 = vpop.f32.mrb[1].mxu1 }
 0x1f6   :  { %311 = vst.msk [vmem:[#allocation6] sm:$0x3] %vm310_vm2, %v307_v28 }
 0x1f7   :  { %460 = shalt.err (!%p457_p13)
}
 0x1f8   :  { %s461_s29 = scalar_lea.hbm %s578_s6, 32 }
 0x1f9   :  { %p462_p0 = scmp.ne.s32.totalorder %s578_s6, %s461_s29  ;;  %p465_p1 = scmp.lt.u32.totalorder %s461_s29, %s578_s6 }
 0x1fb   :  { %p467_p2 = pnand %p465_p1, %p462_p0 }
 0x1fd   :  { %470 = shalt.err (!%p467_p2)
}
 0x1fe   :  { %321 = dma.vmem_to_hbm [thread:$0]  %s319_s27, 32, %s578_s6, [#allocation7]  }
 0x1ff   :  { %477 = dma.done.wait [#allocation7], 32  }
 0x200   :  { %478 = vsyncadd [#allocation7], 4294967264 }
 0x201   :  { %325 = vsyncpa [#allocation7], 1 }
 0x202   :  { %326 = vsyncmov [#allocation3] }
 0x205   :  { %s327_s11 = vpop.sfrf %326 }
 0x206   :  { %p378_p3 = scmp.ne.s32.totalorder %s327_s11, 0 }
 0x208   :  { %331 = shalt.err (%p378_p3)  }
 0x209   :  { %333 = vsyncmov [#allocation3 + $0x1] }
 0x20c   :  { %s334_s1 = vpop.sfrf %333 }
 0x20d   :  { %p379_p4 = scmp.ne.s32.totalorder %s334_s1, 0 }
 0x20f   :  { %338 = shalt.err (%p379_p4)  }

</bundles_post_ra>
